<compile_context>
chip_gen: v7x
topology: tpu7x:2x2x1
jax: 0.10.0
libtpu: 0.0.40
codegen_flags: <defaults>
</compile_context>

<pallas_src>
import functools

import jax
import jax.numpy as jnp
from jax.experimental import pallas as pl
from jax.experimental.pallas import tpu as pltpu


def _round_up(x, m):
    return ((x + m - 1) // m) * m


# ---------------------------------------------------------------------------
# Kernels
# ---------------------------------------------------------------------------
def _fused_kernel(h_ref, r_ref, w_ref, p_ref, o_ref, *, eps, h_valid):
    """Resident-weight variant: one grid axis over row tiles.

    h_ref: [tm, I]   hidden_states row tile (matmul dtype, e.g. bf16)
    r_ref: [tm, Hp]  residual (input_tensor) row tile
    w_ref: [I,  Hp]  full dense weight (pre-transposed vs. PyTorch), resident
    p_ref: [3,  Hp]  packed f32 params: row0=bias, row1=gamma, row2=beta
    o_ref: [tm, Hp]  output row tile
    """
    acc = jnp.dot(h_ref[...], w_ref[...], preferred_element_type=jnp.float32)
    bias = p_ref[0:1, :]
    gamma = p_ref[1:2, :]
    beta = p_ref[2:3, :]
    # TODO(synk): dropout omitted (eval/inference -> identity); training mode
    # would need pltpu.prng_seed / pltpu.prng_random_bits.
    x = acc + bias + r_ref[...].astype(jnp.float32)

    # Padded feature columns of x are exactly zero (weight/bias/residual are
    # zero-padded in the wrapper), so full-width sums == valid-width sums and
    # no masking is needed for the LN statistics.
    inv_h = jnp.float32(1.0 / h_valid)
    s1 = jnp.sum(x, axis=-1, keepdims=True)
    s2 = jnp.sum(x * x, axis=-1, keepdims=True)
    mean = s1 * inv_h
    var = jnp.maximum(s2 * inv_h - mean * mean, 0.0)   # one-pass variance
    inv = jax.lax.rsqrt(var + eps)
    # gamma/beta are zero-padded -> padded output columns store exact 0.
    o_ref[...] = ((x - mean) * inv * gamma + beta).astype(o_ref.dtype)


def _ktiled_kernel(h_ref, r_ref, w_ref, p_ref, o_ref, acc_ref, *, eps, h_valid):
    """Fallback when the full weight does not fit VMEM: K is a reduction axis."""
    k = pl.program_id(1)

    @pl.when(k == 0)
    def _init():
        # Fold the bias into the accumulator init (saves a full-tile add in
        # the epilogue).
        acc_ref[...] = jnp.broadcast_to(p_ref[0:1, :], acc_ref.shape)

    acc_ref[...] += jnp.dot(h_ref[...], w_ref[...],
                            preferred_element_type=jnp.float32)

    @pl.when(k == pl.num_programs(1) - 1)
    def _epilogue():
        gamma = p_ref[1:2, :]
        beta = p_ref[2:3, :]
        x = acc_ref[...] + r_ref[...].astype(jnp.float32)
        inv_h = jnp.float32(1.0 / h_valid)
        s1 = jnp.sum(x, axis=-1, keepdims=True)
        s2 = jnp.sum(x * x, axis=-1, keepdims=True)
        mean = s1 * inv_h
        var = jnp.maximum(s2 * inv_h - mean * mean, 0.0)
        inv = jax.lax.rsqrt(var + eps)
        o_ref[...] = ((x - mean) * inv * gamma + beta).astype(o_ref.dtype)


# ---------------------------------------------------------------------------
# Tiling / capacity helpers
# ---------------------------------------------------------------------------
def _vmem_capacity_bytes():
    # 64 MiB per TC on v7x, 128 MiB on v5e/v6e.  Conservative fallback = 64 MiB.
    try:
        cap = getattr(pltpu.get_tpu_info(), "vmem_capacity_bytes", None)
        if cap:
            return int(cap)
    except Exception:
        pass
    return 64 * 1024 * 1024


def _choose_row_tile(m, itemsize):
    if m >= 2048:
        return 512 if itemsize <= 2 else 256
    if m >= 1024:
        return 256
    if m >= 256:
        return 128
    # Tiny / test shapes: bf16 packs 16 rows per sublane group, so keep the
    # fallback tile a multiple of 16 (not 8).
    tm = min(_round_up(m, 16), 128)
    # v7x shards the "parallel" row axis across 2 TensorCores: prefer >= 2 row
    # tiles whenever there is enough work to split.
    if tm >= m and m >= 32:
        tm = max(16, _round_up(pl.cdiv(m, 2), 16))
    return tm


# ---------------------------------------------------------------------------
# Wrapper
# ---------------------------------------------------------------------------
def transformer_output(hidden_states, input_tensor, w_t, bias, gamma, beta, *,
                       eps=1e-12, use_bf16_matmul=True,
                       force_ktile=False, ktile=None):
    """hidden_states: [B,S,I], input_tensor: [B,S,H] -> [B,S,H].

    w_t is the dense weight pre-transposed to [I, H] (PyTorch stores [H, I]).
    """
    B, S, I = hidden_states.shape
    H = input_tensor.shape[-1]
    M = B * S
    out_dtype = input_tensor.dtype

    # bf16 MXU operands, f32 accumulation; bias/residual/LayerNorm stay f32.
    mm_dtype = jnp.bfloat16 if use_bf16_matmul else hidden_states.dtype
    itemsize = jnp.dtype(mm_dtype).itemsize

    h2 = hidden_states.reshape(M, I).astype(mm_dtype)
    # TODO(synk): if the surrounding model tolerates it, stream the residual
    # and the output as bf16 to halve the 2nd/3rd largest HBM streams.
    r2 = input_tensor.reshape(M, H)
    w2 = w_t.astype(mm_dtype)
    b1 = bias.astype(jnp.float32)
    g1 = gamma.astype(jnp.float32)
    be1 = beta.astype(jnp.float32)

    # Lane-dense output: pad the hidden/channel axis to a multiple of 128 so
    # stores are full-width vst.  NOTE: the padding of weight/bias/gamma/beta/
    # residual MUST remain exactly zero -- the kernels' LayerNorm statistics
    # rely on padded columns of x being zero.
    Hp = _round_up(H, 128)
    if Hp != H:
        pad = Hp - H
        r2 = jnp.pad(r2, ((0, 0), (0, pad)))
        w2 = jnp.pad(w2, ((0, 0), (0, pad)))
        b1 = jnp.pad(b1, (0, pad))
        g1 = jnp.pad(g1, (0, pad))
        be1 = jnp.pad(be1, (0, pad))
    params = jnp.stack([b1, g1, be1], axis=0)  # [3, Hp]

    r_bytes = jnp.dtype(r2.dtype).itemsize
    o_bytes = jnp.dtype(out_dtype).itemsize

    # Row tiling: real "parallel" grid axis -> pipelining + 2-TC sharding.
    tm = _choose_row_tile(M, itemsize)
    Mp = _round_up(M, tm)
    if Mp != M:
        h2 = jnp.pad(h2, ((0, Mp - M), (0, 0)))
        r2 = jnp.pad(r2, ((0, Mp - M), (0, 0)))
    nm = Mp // tm

    # Per-generation VMEM budget: chip capacity minus ~8 MiB headroom for
    # Mosaic internal scratch (so we never sit exactly on the physical limit).
    budget = _vmem_capacity_bytes() - 8 * 1024 * 1024

    # Fused (resident-weight) VMEM estimate; count 2 buffers for the weight in
    # case the Buffered(1) hint is not honored.
    fused_need = (2 * tm * I * itemsize        # hidden row tiles
                  + 2 * tm * Hp * r_bytes      # residual row tiles
                  + 2 * tm * Hp * o_bytes      # output row tiles
                  + 2 * I * Hp * itemsize      # resident weight
                  + 2 * 3 * Hp * 4)            # packed params
    use_fused = (not force_ktile) and (fused_need <= budget)

    if use_fused:
        tk, nk = I, 1
        vmem_need = fused_need
        weight_hbm_bytes = I * Hp * itemsize          # fetched exactly once
    else:
        # K (intermediate) reduction axis with an f32 accumulator.  Prefer
        # growing tm over shrinking tk further (weight traffic ~ nm * I * Hp).
        if ktile is not None:
            assert I % ktile == 0, "ktile must divide intermediate size"
            tk = ktile
        elif I > 512 and I % 512 == 0:
            tk = 512
        else:
            tk = I
        nk = I // tk
        vmem_need = (2 * tm * tk * itemsize
                     + 2 * tm * Hp * r_bytes
                     + 2 * tm * Hp * o_bytes
                     + 2 * tk * Hp * itemsize
                     + 2 * 3 * Hp * 4
                     + tm * Hp * 4)                   # accumulator scratch
        weight_hbm_bytes = nm * I * Hp * itemsize     # re-streamed per row tile

    vmem_limit = int(min(budget, max(int(1.5 * vmem_need), 16 * 1024 * 1024)))

    cost = pl.CostEstimate(
        flops=2 * M * I * Hp,
        transcendentals=M,  # one rsqrt per row
        bytes_accessed=int(M * I * itemsize           # hidden_states read
                           + weight_hbm_bytes         # weight read(s)
                           + M * Hp * r_bytes         # residual read
                           + 3 * Hp * 4               # params read
                           + M * Hp * o_bytes),       # output write
    )

    def _run(single_buffer_consts):
        def const_spec(shape):
            # Constant index_map across the whole grid -> the block is DMA'd
            # once and stays resident; Buffered(1) additionally drops the
            # (unused) second pipeline buffer.
            idx = (lambda i: (0, 0)) if use_fused else (lambda i, k: (0, 0))
            if single_buffer_consts:
                return pl.BlockSpec(shape, idx, pipeline_mode=pl.Buffered(1))
            return pl.BlockSpec(shape, idx)

        if use_fused:
            grid_spec = pltpu.PrefetchScalarGridSpec(
                num_scalar_prefetch=0,
                grid=(nm,),
                in_specs=[
                    pl.BlockSpec((tm, I), lambda i: (i, 0)),   # hidden tile
                    pl.BlockSpec((tm, Hp), lambda i: (i, 0)),  # residual tile
                    const_spec((I, Hp)),                       # resident weight
                    const_spec((3, Hp)),                       # bias/gamma/beta
                ],
                out_specs=pl.BlockSpec((tm, Hp), lambda i: (i, 0)),
            )
            kernel = functools.partial(_fused_kernel, eps=float(eps), h_valid=H)
            dims = ("parallel",)
        else:
            grid_spec = pltpu.PrefetchScalarGridSpec(
                num_scalar_prefetch=0,
                grid=(nm, nk),
                in_specs=[
                    pl.BlockSpec((tm, tk), lambda i, k: (i, k)),   # hidden
                    pl.BlockSpec((tm, Hp), lambda i, k: (i, 0)),   # residual
                    pl.BlockSpec((tk, Hp), lambda i, k: (k, 0)),   # weight
                    const_spec((3, Hp)),                           # params
                ],
                out_specs=pl.BlockSpec((tm, Hp), lambda i, k: (i, 0)),
                scratch_shapes=[pltpu.VMEM((tm, Hp), jnp.float32)],
            )
            kernel = functools.partial(_ktiled_kernel, eps=float(eps), h_valid=H)
            dims = ("parallel", "arbitrary")

        return pl.pallas_call(
            kernel,
            out_shape=jax.ShapeDtypeStruct((Mp, Hp), out_dtype),
            grid_spec=grid_spec,
            compiler_params=pltpu.CompilerParams(
                dimension_semantics=dims,
                vmem_limit_bytes=vmem_limit,
            ),
            cost_estimate=cost,
        )(h2, r2, w2, params)

    try:
        out2 = _run(True)
    except Exception:
        # pipeline_mode=pl.Buffered(1) is only a VMEM optimization; fall back
        # to default double buffering if this JAX build rejects it.
        out2 = _run(False)

    return out2[:M, :H].reshape(B, S, H)


def reference(hidden_states, input_tensor, w_t, bias, gamma, beta, eps,
              use_bf16_matmul=True):
    # Matches the kernel's numerics (bf16 matmul operands, f32 accumulation,
    # f32 LayerNorm epilogue).
    if use_bf16_matmul:
        hs = hidden_states.astype(jnp.bfloat16)
        w = w_t.astype(jnp.bfloat16)
    else:
        hs, w = hidden_states, w_t
    x = jnp.einsum("bsi,ih->bsh", hs, w,
                   preferred_element_type=jnp.float32) + bias
    x = x + input_tensor
    mean = jnp.mean(x, axis=-1, keepdims=True)
    var = jnp.mean((x - mean) ** 2, axis=-1, keepdims=True)
    return (x - mean) * jax.lax.rsqrt(var + eps) * gamma + beta


if __name__ == "__main__":
    eps = 1e-12
    keys = jax.random.split(jax.random.PRNGKey(0), 8)

    # --- Test 1: small config; exercises the fused resident-weight path. ---
    B, S, H, I = 2, 8, 32, 64
    hidden_states = jax.random.normal(keys[0], (B, S, I), dtype=jnp.float32)
    input_tensor = jax.random.normal(keys[1], (B, S, H), dtype=jnp.float32)
    w_t = jax.random.normal(keys[2], (I, H), dtype=jnp.float32) * (1.0 / I ** 0.5)
    bias = jax.random.normal(keys[3], (H,), dtype=jnp.float32) * 0.02
    gamma = jnp.ones((H,), dtype=jnp.float32)
    beta = jnp.zeros((H,), dtype=jnp.float32)

    out = transformer_output(hidden_states, input_tensor, w_t, bias, gamma,
                             beta, eps=eps)
    out = jax.block_until_ready(out)
    ref = reference(hidden_states, input_tensor, w_t, bias, gamma, beta, eps)
    assert out.shape == (B, S, H)
    err = float(jnp.max(jnp.abs(out - ref)))
    assert jnp.allclose(out, ref, atol=1e-3, rtol=1e-3), (
        f"fused path mismatch vs reference (max abs err {err})")

    # --- Test 2: exercise the K-tiled fallback path (nk=2) explicitly. ---
    B2, S2, H2, I2 = 2, 8, 64, 256
    hs2 = jax.random.normal(keys[4], (B2, S2, I2), dtype=jnp.float32)
    it2 = jax.random.normal(keys[5], (B2, S2, H2), dtype=jnp.float32)
    wt2 = jax.random.normal(keys[6], (I2, H2), dtype=jnp.float32) * (1.0 / I2 ** 0.5)
    b2 = jax.random.normal(keys[7], (H2,), dtype=jnp.float32) * 0.02
    g2 = jnp.ones((H2,), dtype=jnp.float32)
    be2 = jnp.zeros((H2,), dtype=jnp.float32)

    out2 = transformer_output(hs2, it2, wt2, b2, g2, be2, eps=eps,
                              force_ktile=True, ktile=128)
    out2 = jax.block_until_ready(out2)
    ref2 = reference(hs2, it2, wt2, b2, g2, be2, eps)
    err2 = float(jnp.max(jnp.abs(out2 - ref2)))
    assert jnp.allclose(out2, ref2, atol=1e-3, rtol=1e-3), (
        f"k-tiled path mismatch vs reference (max abs err {err2})")

    print("KERNEL_OK")
</pallas_src>

<mosaic_0001>
module attributes {stable_mosaic.version = 11 : i64} {
  func.func @_fused_kernel(%arg0: i32, %arg1: memref<16x64xbf16, #tpu.memory_space<vmem>>, %arg2: memref<16x128xf32, #tpu.memory_space<vmem>>, %arg3: memref<64x128xbf16, #tpu.memory_space<vmem>>, %arg4: memref<3x128xf32, #tpu.memory_space<vmem>>, %arg5: memref<16x128xf32, #tpu.memory_space<vmem>>) attributes {dimension_semantics = [#tpu.dimension_semantics<parallel>], iteration_bounds = array<i64: 1>, scalar_prefetch = 0 : i64, scratch_operands = 0 : i64, tpu.core_type = #tpu.core_type<tc>, window_params = [{transform_indices = @transform_0, window_bounds = array<i64: 16, 64>}, {transform_indices = @transform_1, window_bounds = array<i64: 16, 128>}, {pipeline_mode = #tpu.pipeline_mode<synchronous>, transform_indices = @transform_2, window_bounds = array<i64: 64, 128>}, {pipeline_mode = #tpu.pipeline_mode<synchronous>, transform_indices = @transform_3, window_bounds = array<i64: 3, 128>}, {transform_indices = @transform_4, window_bounds = array<i64: 16, 128>}]} {
    %c0 = arith.constant 0 : index
    %c0_0 = arith.constant 0 : index
    %0 = vector.load %arg1[%c0, %c0_0] : memref<16x64xbf16, #tpu.memory_space<vmem>>, vector<16x64xbf16>
    %c0_1 = arith.constant 0 : index
    %c0_2 = arith.constant 0 : index
    %1 = vector.load %arg3[%c0_1, %c0_2] : memref<64x128xbf16, #tpu.memory_space<vmem>>, vector<64x128xbf16>
    %cst = arith.constant dense<0.000000e+00> : vector<16x128xf32>
    %2 = tpu.matmul %0, %1, %cst {dimension_numbers = #tpu.dot_dimension_numbers<[1], [0], [0], [1], [0, 0, 1, 1], [], []>} : vector<16x64xbf16>, vector<64x128xbf16>, vector<16x128xf32> -> vector<16x128xf32>
    %c0_3 = arith.constant 0 : index
    %c0_4 = arith.constant 0 : index
    %3 = vector.load %arg4[%c0_3, %c0_4] : memref<3x128xf32, #tpu.memory_space<vmem>>, vector<1x128xf32>
    %c1 = arith.constant 1 : index
    %c0_5 = arith.constant 0 : index
    %4 = vector.load %arg4[%c1, %c0_5] : memref<3x128xf32, #tpu.memory_space<vmem>>, vector<1x128xf32>
    %c2 = arith.constant 2 : index
    %c0_6 = arith.constant 0 : index
    %5 = vector.load %arg4[%c2, %c0_6] : memref<3x128xf32, #tpu.memory_space<vmem>>, vector<1x128xf32>
    %6 = vector.broadcast %3 : vector<1x128xf32> to vector<16x128xf32>
    %7 = arith.addf %2, %6 : vector<16x128xf32>
    %c0_7 = arith.constant 0 : index
    %c0_8 = arith.constant 0 : index
    %8 = vector.load %arg2[%c0_7, %c0_8] : memref<16x128xf32, #tpu.memory_space<vmem>>, vector<16x128xf32>
    %9 = arith.addf %7, %8 : vector<16x128xf32>
    %cst_9 = arith.constant dense<0.000000e+00> : vector<16xf32>
    %10 = vector.multi_reduction <add>, %9, %cst_9 [1] : vector<16x128xf32> to vector<16xf32>
    %11 = vector.shape_cast %10 : vector<16xf32> to vector<16x1xf32>
    %12 = arith.mulf %9, %9 : vector<16x128xf32>
    %cst_10 = arith.constant dense<0.000000e+00> : vector<16xf32>
    %13 = vector.multi_reduction <add>, %12, %cst_10 [1] : vector<16x128xf32> to vector<16xf32>
    %14 = vector.shape_cast %13 : vector<16xf32> to vector<16x1xf32>
    %cst_11 = arith.constant 3.125000e-02 : f32
    %15 = vector.broadcast %cst_11 : f32 to vector<16x1xf32>
    %16 = arith.mulf %11, %15 : vector<16x1xf32>
    %cst_12 = arith.constant 3.125000e-02 : f32
    %17 = vector.broadcast %cst_12 : f32 to vector<16x1xf32>
    %18 = arith.mulf %14, %17 : vector<16x1xf32>
    %19 = arith.mulf %16, %16 : vector<16x1xf32>
    %20 = arith.subf %18, %19 : vector<16x1xf32>
    %cst_13 = arith.constant 0.000000e+00 : f32
    %21 = vector.broadcast %cst_13 : f32 to vector<16x1xf32>
    %22 = arith.maximumf %20, %21 : vector<16x1xf32>
    %cst_14 = arith.constant 9.99999996E-13 : f32
    %23 = vector.broadcast %cst_14 : f32 to vector<16x1xf32>
    %24 = arith.addf %22, %23 : vector<16x1xf32>
    %25 = math.rsqrt %24 : vector<16x1xf32>
    %26 = vector.broadcast %16 : vector<16x1xf32> to vector<16x128xf32>
    %27 = arith.subf %9, %26 : vector<16x128xf32>
    %28 = vector.broadcast %25 : vector<16x1xf32> to vector<16x128xf32>
    %29 = arith.mulf %27, %28 : vector<16x128xf32>
    %30 = vector.broadcast %4 : vector<1x128xf32> to vector<16x128xf32>
    %31 = arith.mulf %29, %30 : vector<16x128xf32>
    %32 = vector.broadcast %5 : vector<1x128xf32> to vector<16x128xf32>
    %33 = arith.addf %31, %32 : vector<16x128xf32>
    %c0_15 = arith.constant 0 : index
    %c0_16 = arith.constant 0 : index
    %34 = vector.load %arg5[%c0_15, %c0_16] : memref<16x128xf32, #tpu.memory_space<vmem>>, vector<16x128xf32>
    tpu.vector_store %arg5[%c0_15, %c0_16], %33 {strides = array<i32>} : memref<16x128xf32, #tpu.memory_space<vmem>>, vector<16x128xf32>,
    return
  }
  func.func @transform_0(%arg0: i32) -> (i32, i32) {
    %c0_i32 = arith.constant 0 : i32
    %c0_i32_0 = arith.constant 0 : i32
    return %arg0, %c0_i32 : i32, i32
  }
  func.func @transform_1(%arg0: i32) -> (i32, i32) {
    %c0_i32 = arith.constant 0 : i32
    %c0_i32_0 = arith.constant 0 : i32
    return %arg0, %c0_i32 : i32, i32
  }
  func.func @transform_2(%arg0: i32) -> (i32, i32) {
    %c0_i32 = arith.constant 0 : i32
    %c0_i32_0 = arith.constant 0 : i32
    %c0_i32_1 = arith.constant 0 : i32
    return %c0_i32, %c0_i32_0 : i32, i32
  }
  func.func @transform_3(%arg0: i32) -> (i32, i32) {
    %c0_i32 = arith.constant 0 : i32
    %c0_i32_0 = arith.constant 0 : i32
    %c0_i32_1 = arith.constant 0 : i32
    return %c0_i32, %c0_i32_0 : i32, i32
  }
  func.func @transform_4(%arg0: i32) -> (i32, i32) {
    %c0_i32 = arith.constant 0 : i32
    %c0_i32_0 = arith.constant 0 : i32
    return %arg0, %c0_i32 : i32, i32
  }
}

module attributes {stable_mosaic.version = 11 : i64} {
  func.func @_fused_kernel(%arg0: i32, %arg1: memref<16x64xbf16, #tpu.memory_space<vmem>>, %arg2: memref<16x128xf32, #tpu.memory_space<vmem>>, %arg3: memref<64x128xbf16, #tpu.memory_space<vmem>>, %arg4: memref<3x128xf32, #tpu.memory_space<vmem>>, %arg5: memref<16x128xf32, #tpu.memory_space<vmem>>) attributes {dimension_semantics = [#tpu.dimension_semantics<parallel>], iteration_bounds = array<i64: 1>, scalar_prefetch = 0 : i64, scratch_operands = 0 : i64, tpu.core_type = #tpu.core_type<tc>, window_params = [{transform_indices = @transform_0, window_bounds = array<i64: 16, 64>}, {transform_indices = @transform_1, window_bounds = array<i64: 16, 128>}, {pipeline_mode = #tpu.pipeline_mode<synchronous>, transform_indices = @transform_2, window_bounds = array<i64: 64, 128>}, {pipeline_mode = #tpu.pipeline_mode<synchronous>, transform_indices = @transform_3, window_bounds = array<i64: 3, 128>}, {transform_indices = @transform_4, window_bounds = array<i64: 16, 128>}]} {
    %c0 = arith.constant 0 : index
    %c0_0 = arith.constant 0 : index
    %0 = vector.load %arg1[%c0, %c0_0] : memref<16x64xbf16, #tpu.memory_space<vmem>>, vector<16x64xbf16>
    %c0_1 = arith.constant 0 : index
    %c0_2 = arith.constant 0 : index
    %1 = vector.load %arg3[%c0_1, %c0_2] : memref<64x128xbf16, #tpu.memory_space<vmem>>, vector<64x128xbf16>
    %cst = arith.constant dense<0.000000e+00> : vector<16x128xf32>
    %2 = tpu.matmul %0, %1, %cst {dimension_numbers = #tpu.dot_dimension_numbers<[1], [0], [0], [1], [0, 0, 1, 1], [], []>} : vector<16x64xbf16>, vector<64x128xbf16>, vector<16x128xf32> -> vector<16x128xf32>
    %c0_3 = arith.constant 0 : index
    %c0_4 = arith.constant 0 : index
    %3 = vector.load %arg4[%c0_3, %c0_4] : memref<3x128xf32, #tpu.memory_space<vmem>>, vector<1x128xf32>
    %c1 = arith.constant 1 : index
    %c0_5 = arith.constant 0 : index
    %4 = vector.load %arg4[%c1, %c0_5] : memref<3x128xf32, #tpu.memory_space<vmem>>, vector<1x128xf32>
    %c2 = arith.constant 2 : index
    %c0_6 = arith.constant 0 : index
    %5 = vector.load %arg4[%c2, %c0_6] : memref<3x128xf32, #tpu.memory_space<vmem>>, vector<1x128xf32>
    %6 = vector.broadcast %3 : vector<1x128xf32> to vector<16x128xf32>
    %7 = arith.addf %2, %6 : vector<16x128xf32>
    %c0_7 = arith.constant 0 : index
    %c0_8 = arith.constant 0 : index
    %8 = vector.load %arg2[%c0_7, %c0_8] : memref<16x128xf32, #tpu.memory_space<vmem>>, vector<16x128xf32>
    %9 = arith.addf %7, %8 : vector<16x128xf32>
    %cst_9 = arith.constant dense<0.000000e+00> : vector<16xf32>
    %10 = vector.multi_reduction <add>, %9, %cst_9 [1] : vector<16x128xf32> to vector<16xf32>
    %11 = vector.shape_cast %10 : vector<16xf32> to vector<16x1xf32>
    %12 = arith.mulf %9, %9 : vector<16x128xf32>
    %cst_10 = arith.constant dense<0.000000e+00> : vector<16xf32>
    %13 = vector.multi_reduction <add>, %12, %cst_10 [1] : vector<16x128xf32> to vector<16xf32>
    %14 = vector.shape_cast %13 : vector<16xf32> to vector<16x1xf32>
    %cst_11 = arith.constant 3.125000e-02 : f32
    %15 = vector.broadcast %cst_11 : f32 to vector<16x1xf32>
    %16 = arith.mulf %11, %15 : vector<16x1xf32>
    %cst_12 = arith.constant 3.125000e-02 : f32
    %17 = vector.broadcast %cst_12 : f32 to vector<16x1xf32>
    %18 = arith.mulf %14, %17 : vector<16x1xf32>
    %19 = arith.mulf %16, %16 : vector<16x1xf32>
    %20 = arith.subf %18, %19 : vector<16x1xf32>
    %cst_13 = arith.constant 0.000000e+00 : f32
    %21 = vector.broadcast %cst_13 : f32 to vector<16x1xf32>
    %22 = arith.maximumf %20, %21 : vector<16x1xf32>
    %cst_14 = arith.constant 9.99999996E-13 : f32
    %23 = vector.broadcast %cst_14 : f32 to vector<16x1xf32>
    %24 = arith.addf %22, %23 : vector<16x1xf32>
    %25 = math.rsqrt %24 : vector<16x1xf32>
    %26 = vector.broadcast %16 : vector<16x1xf32> to vector<16x128xf32>
    %27 = arith.subf %9, %26 : vector<16x128xf32>
    %28 = vector.broadcast %25 : vector<16x1xf32> to vector<16x128xf32>
    %29 = arith.mulf %27, %28 : vector<16x128xf32>
    %30 = vector.broadcast %4 : vector<1x128xf32> to vector<16x128xf32>
    %31 = arith.mulf %29, %30 : vector<16x128xf32>
    %32 = vector.broadcast %5 : vector<1x128xf32> to vector<16x128xf32>
    %33 = arith.addf %31, %32 : vector<16x128xf32>
    %c0_15 = arith.constant 0 : index
    %c0_16 = arith.constant 0 : index
    %34 = vector.load %arg5[%c0_15, %c0_16] : memref<16x128xf32, #tpu.memory_space<vmem>>, vector<16x128xf32>
    tpu.vector_store %arg5[%c0_15, %c0_16], %33 {strides = array<i32>} : memref<16x128xf32, #tpu.memory_space<vmem>>, vector<16x128xf32>,
    return
  }
  func.func @transform_0(%arg0: i32) -> (i32, i32) {
    %c0_i32 = arith.constant 0 : i32
    %c0_i32_0 = arith.constant 0 : i32
    return %arg0, %c0_i32 : i32, i32
  }
  func.func @transform_1(%arg0: i32) -> (i32, i32) {
    %c0_i32 = arith.constant 0 : i32
    %c0_i32_0 = arith.constant 0 : i32
    return %arg0, %c0_i32 : i32, i32
  }
  func.func @transform_2(%arg0: i32) -> (i32, i32) {
    %c0_i32 = arith.constant 0 : i32
    %c0_i32_0 = arith.constant 0 : i32
    %c0_i32_1 = arith.constant 0 : i32
    return %c0_i32, %c0_i32_0 : i32, i32
  }
  func.func @transform_3(%arg0: i32) -> (i32, i32) {
    %c0_i32 = arith.constant 0 : i32
    %c0_i32_0 = arith.constant 0 : i32
    %c0_i32_1 = arith.constant 0 : i32
    return %c0_i32, %c0_i32_0 : i32, i32
  }
  func.func @transform_4(%arg0: i32) -> (i32, i32) {
    %c0_i32 = arith.constant 0 : i32
    %c0_i32_0 = arith.constant 0 : i32
    return %arg0, %c0_i32 : i32, i32
  }
}

</mosaic_0001>

<bundles_post_ra>
// kernel: tpu_custom_call.1
= control target key start
LH: loop header
LB: loop body
LE: loop exit
PB: predicated region body
PF: predicated region fallthrough
CT: control target
= control target key end

     0   :  { %9 = vsyncpa [#allocation3], 0  ;;  %s452_s0 = inlined_call_operand.hbm [shape: bf16[16,64], index: 0, kind: input, shape index: {}]   ;;  %s453_s1 = inlined_call_operand.hbm [shape: f32[16,128], index: 1, kind: input, shape index: {}]   ;;  %s454_s2 = inlined_call_operand.hbm [shape: bf16[64,128], index: 2, kind: input, shape index: {}]   ;;  %s455_s3 = inlined_call_operand.vmem [shape: f32[3,128], index: 3, kind: input, shape index: {}]   ;;  %s456_s4 = inlined_call_operand.hbm [shape: f32[16,128], index: 4, kind: output, shape index: {}]  }
   0x1   :  { %10 = vsyncpa [#allocation6], 0 }
   0x2   :  { %11 = vsyncpa [#allocation4], 0  ;;  %s354_s15 = smov [#allocation5]   ;;  %s260_s19 = scalar_lea.hbm %s453_s1, 256 }
   0x3   :  { %s29_s16 = sshll.u32 %s354_s15, 4  ;;  %p261_p0 = scmp.ne.s32.totalorder %s453_s1, %s260_s19  ;;  %s30_s16 = int_to_ptr.vmem [resolvable:$true] %s29_s16 }
   0x4   :  { %p264_p1 = scmp.lt.u32.totalorder %s260_s19, %s453_s1 }
   0x6   :  { %p266_p2 = pnand %p264_p1, %p261_p0 }
   0x8   :  { %269 = shalt.err (!%p266_p2)
}
   0x9   :  { %s270_s24 = scalar_lea.vmem %s30_s16, 256  ;;  %p275_p4 = scmp.lt.s32.totalorder %s30_s16, %s30_s16 }
   0xa   :  { %p271_p3 = scmp.ne.s32.totalorder %s30_s16, %s270_s24  ;;  %p276_p5 = scmp.lt.s32.totalorder %s270_s24, %s270_s24 }
   0xc   :  { %p277_p6 = por %p276_p5, %p275_p4 }
   0xe   :  { %p278_p7 = pnand %p277_p6, %p271_p3 }
  0x10   :  { %281 = shalt.err (!%p278_p7)
}
  0x11   :  { %s355_s25 = smov 128   ;;  %s356_s26 = smov 8  }
  0x12   :  { %35 = dma.hbm_to_vmem [thread:$0]  %s453_s1, 256, %s30_s16, [#allocation6], %s355_s25, %s355_s25, %s356_s26  }
  0x13   :  { %s357_s29 = smov [#allocation2]   ;;  %s282_s7 = scalar_lea.hbm %s452_s0, 128 }
  0x14   :  { %s17_s30 = sshll.u32 %s357_s29, 4  ;;  %p283_p8 = scmp.ne.s32.totalorder %s452_s0, %s282_s7  ;;  %s18_s30 = int_to_ptr.vmem [resolvable:$true] %s17_s30 }
  0x15   :  { %p286_p9 = scmp.lt.u32.totalorder %s282_s7, %s452_s0 }
  0x17   :  { %p288_p10 = pnand %p286_p9, %p283_p8 }
  0x19   :  { %291 = shalt.err (!%p288_p10)
}
  0x1a   :  { %s292_s12 = scalar_lea.vmem %s18_s30, 128  ;;  %p297_p12 = scmp.lt.s32.totalorder %s18_s30, %s18_s30 }
  0x1b   :  { %p293_p11 = scmp.ne.s32.totalorder %s18_s30, %s292_s12  ;;  %p298_p13 = scmp.lt.s32.totalorder %s292_s12, %s292_s12 }
  0x1d   :  { %p299_p0 = por %p298_p13, %p297_p12 }
  0x1f   :  { %p300_p1 = pnand %p299_p0, %p293_p11 }
  0x21   :  { %303 = shalt.err (!%p300_p1)
}
  0x22   :  { %s358_s1 = smov 64   ;;  %s359_s13 = smov 4  }
  0x23   :  { %23 = dma.hbm_to_vmem [thread:$0]  %s452_s0, 128, %s18_s30, [#allocation3], %s358_s1, %s358_s1, %s359_s13  }
  0x24   :  { %s360_s16 = smov [#allocation7]   ;;  %s304_s20 = scalar_lea.hbm %s454_s2, 512 }
  0x25   :  { %s41_s17 = sshll.u32 %s360_s16, 4  ;;  %p305_p2 = scmp.ne.s32.totalorder %s454_s2, %s304_s20  ;;  %s42_s17 = int_to_ptr.vmem [resolvable:$true] %s41_s17 }
  0x26   :  { %p308_p3 = scmp.lt.u32.totalorder %s304_s20, %s454_s2 }
  0x28   :  { %p310_p4 = pnand %p308_p3, %p305_p2 }
  0x2a   :  { %313 = shalt.err (!%p310_p4)
}
  0x2b   :  { %s314_s27 = scalar_lea.vmem %s42_s17, 512  ;;  %p319_p6 = scmp.lt.s32.totalorder %s42_s17, %s42_s17 }
  0x2c   :  { %p315_p5 = scmp.ne.s32.totalorder %s42_s17, %s314_s27  ;;  %p320_p7 = scmp.lt.s32.totalorder %s314_s27, %s314_s27 }
  0x2e   :  { %p321_p8 = por %p320_p7, %p319_p6 }
  0x30   :  { %p322_p9 = pnand %p321_p8, %p315_p5 }
  0x32   :  { %325 = shalt.err (!%p322_p9)
}
  0x33   :  { %47 = dma.hbm_to_vmem [thread:$0]  %s454_s2, 512, %s42_s17, [#allocation6], %s358_s1, %s358_s1, %s359_s13  }
  0x34   :  { %348 = dma.done.wait [#allocation3], 128  }
  0x35   :  { %349 = vsyncadd [#allocation3], 4294967168 }
  0x36   :  { %350 = dma.done.wait [#allocation6], 768  }
  0x37   :  { %351 = vsyncadd [#allocation6], 4294966528  ;;  %v361_v0 = vmov 0.0   ;;  %vm362_vm0 = vmmov 0   ;;  %v251_v1 = vld [vmem:[#allocation7] sm:$0xff]   ;;  %v252_v2 = vld [vmem:[#allocation7 + $0x8] sm:$0xff]  }
  0x38   :  { %229 = vmatprep.subr.bf16.mxu0 %v361_v0  ;;  %237 = vmatprep.mubr.msk.bf16.mxu0 %vm362_vm0, %v361_v0  ;;  %v253_v3 = vld [vmem:[#allocation7 + $0x10] sm:$0xff]   ;;  %v254_v4 = vld [vmem:[#allocation7 + $0x18] sm:$0xff]   ;;  %v255_v5 = vld [vmem:[#allocation2] sm:$0xff]   ;;  %vm106_vm1 = vcmask 523264   ;;  %s363_s8 = smov [#allocation8]  }
  0x39   :  { %230 = vmatpush3.bf16.msra.mxu0 %v251_v1  ;;  %v215_v6 = vld [vmem:[%s455_s3] ss:$0 sm:$0xff]  ;;  %v151_v8 = vld [vmem:[#allocation5] sm:$0xff]  ;;  %v152_v12 = vld [vmem:[#allocation5 + $0x8] sm:$0xff]  ;;  %s202_s9 = sshll.u32 %s363_s8, 4  ;;  %s203_s9 = int_to_ptr.vmem [resolvable:$true] %s202_s9 }
  0x3a   :  { %231 = vmatprep.subr.bf16.mxu0 %v361_v0  ;;  %v222_v37 = vld [vmem:[%s455_s3 + $0x1] ss:$0 sm:$0xff]  ;;  %v223_v39 = vld [vmem:[%s455_s3 + $0x2] ss:$0 sm:$0xff]  ;;  %s326_s10 = scalar_lea.vmem %s203_s9, 256  ;;  %p331_p11 = scmp.lt.s32.totalorder %s203_s9, %s203_s9 }
  0x3b   :  { %p327_p10 = scmp.ne.s32.totalorder %s203_s9, %s326_s10  ;;  %p332_p12 = scmp.lt.s32.totalorder %s326_s10, %s326_s10 }
  0x3d   :  { %232 = vmatpush3.bf16.msra.mxu0 %v252_v2  ;;  %p333_p13 = por %p332_p12, %p331_p11 }
  0x3e   :  { %233 = vmatprep.subr.bf16.mxu0 %v361_v0 }
  0x3f   :  { %p334_p0 = pnand %p333_p13, %p327_p10 }
  0x41   :  { %234 = vmatpush3.bf16.msra.mxu0 %v253_v3 }
  0x42   :  { %235 = vmatprep.subr.bf16.mxu0 %v361_v0 }
  0x45   :  { %236 = vmatpush3.bf16.msra.mxu0 %v254_v4 }
  0x48   :  { %238 = vmatmul.mubr.msk.bf16.vlgmr.msra.gmra.mrb[0].mxu0 %vm106_vm1, %v255_v5 }
 0x11b   :  { %v144_v7 = vpop.f32.mrb[0].mxu0 }
 0x11c   :  { %v145_v9 = vadd.f32 %v215_v6, %v144_v7  ;;  %v239_v10 = vpop.f32.mrb[1].mxu0 }
 0x11d   :  { %v147_v11 = vpop.f32.mrb[2].mxu0 }
 0x11e   :  { %v153_v13 = vadd.f32 %v151_v8, %v145_v9  ;;  %v148_v14 = vadd.f32 %v215_v6, %v147_v11  ;;  %v240_v15 = vpop.f32.mrb[3].mxu0 }
 0x120   :  { %v154_v16 = vadd.f32 %v152_v12, %v148_v14  ;;  %155 = vadd.xlane.f32.xlu0 %v153_v13  ;;  %v159_v17 = vmul.f32 %v153_v13, %v153_v13 }
 0x122   :  { %161 = vadd.xlane.f32.xlu1 %v159_v17  ;;  %v160_v18 = vmul.f32 %v154_v16, %v154_v16 }
 0x124   :  { %157 = vadd.xlane.f32.xlu0 %v154_v16 }
 0x126   :  { %163 = vadd.xlane.f32.xlu1 %v160_v18 }
 0x1ad   :  { %v156_v19 = vpop.xlane.xlu0 %155 }
 0x1ae   :  { %v165_v20 = vmul.f32 0.03125, %v156_v19 }
 0x1af   :  { %v162_v21 = vpop.xlane.xlu1 %161 }
 0x1b0   :  { %v169_v22 = vmul.f32 %v165_v20, %v165_v20  ;;  %v167_v23 = vmul.f32 0.03125, %v162_v21  ;;  %v179_v35 = vsub.f32 %v153_v13, %v165_v20 }
 0x1b1   :  { %v158_v24 = vpop.xlane.xlu0 %157 }
 0x1b2   :  { %v171_v25 = vsub.f32 %v167_v23, %v169_v22  ;;  %v166_v26 = vmul.f32 0.03125, %v158_v24 }
 0x1b3   :  { %v164_v27 = vpop.xlane.xlu1 %163 }
 0x1b4   :  { %v173_v28 = vmax.f32 %v171_v25, 0.0  ;;  %v170_v29 = vmul.f32 %v166_v26, %v166_v26  ;;  %v168_v30 = vmul.f32 0.03125, %v164_v27  ;;  %v180_v40 = vsub.f32 %v154_v16, %v166_v26 }
 0x1b6   :  { %v175_v31 = vadd.f32 1e-12, %v173_v28  ;;  %v172_v32 = vsub.f32 %v168_v30, %v170_v29 }
 0x1b8   :  { %256 = vrsqrt.f32 %v175_v31  ;;  %v174_v33 = vmax.f32 %v172_v32, 0.0 }
 0x1ba   :  { %v176_v34 = vadd.f32 1e-12, %v174_v33 }
 0x1bc   :  { %258 = vrsqrt.f32 %v176_v34 }
 0x1c2   :  { %v257_v36 = vpop.eup %256 }
 0x1c3   :  { %v181_v38 = vmul.f32 %v257_v36, %v179_v35 }
 0x1c5   :  { %v187_v41 = vmul.f32 %v222_v37, %v181_v38 }
 0x1c6   :  { %v259_v42 = vpop.eup %258 }
 0x1c7   :  { %v182_v43 = vmul.f32 %v259_v42, %v180_v40  ;;  %v193_v44 = vadd.f32 %v223_v39, %v187_v41 }
 0x1c9   :  { %v188_v45 = vmul.f32 %v222_v37, %v182_v43  ;;  %195 = vst [vmem:[#allocation8] sm:$0xff] %v193_v44 }
 0x1cb   :  { %v194_v46 = vadd.f32 %v223_v39, %v188_v45 }
 0x1cd   :  { %196 = vst [vmem:[#allocation8 + $0x8] sm:$0xff] %v194_v46 }
 0x1ce   :  { %337 = shalt.err (!%p334_p0)
}
 0x1cf   :  { %s338_s12 = scalar_lea.hbm %s456_s4, 256 }
 0x1d0   :  { %p339_p1 = scmp.ne.s32.totalorder %s456_s4, %s338_s12  ;;  %p342_p2 = scmp.lt.u32.totalorder %s338_s12, %s456_s4 }
 0x1d2   :  { %p344_p3 = pnand %p342_p2, %p339_p1 }
 0x1d4   :  { %347 = shalt.err (!%p344_p3)
}
 0x1d5   :  { %208 = dma.vmem_to_hbm [thread:$0]  %s203_s9, 256, %s456_s4, [#allocation4], %s355_s25, %s355_s25, %s356_s26  }
 0x1d6   :  { %352 = dma.done.wait [#allocation4], 256  }
 0x1d7   :  { %353 = vsyncadd [#allocation4], 4294967040 }
 0x1d8   :  { %212 = vsyncpa [#allocation3], 1 }
 0x1d9   :  { %213 = vsyncpa [#allocation6], 1 }
 0x1da   :  { %214 = vsyncpa [#allocation4], 1 }

// kernel: tpu_custom_call.1
= control target key start
LH: loop header
LB: loop body
LE: loop exit
PB: predicated region body
PF: predicated region fallthrough
CT: control target
= control target key end

     0   :  { %9 = vsyncpa [#allocation3], 0  ;;  %s452_s0 = inlined_call_operand.hbm [shape: bf16[16,64], index: 0, kind: input, shape index: {}]   ;;  %s453_s1 = inlined_call_operand.hbm [shape: f32[16,128], index: 1, kind: input, shape index: {}]   ;;  %s454_s2 = inlined_call_operand.hbm [shape: bf16[64,128], index: 2, kind: input, shape index: {}]   ;;  %s455_s3 = inlined_call_operand.vmem [shape: f32[3,128], index: 3, kind: input, shape index: {}]   ;;  %s456_s4 = inlined_call_operand.hbm [shape: f32[16,128], index: 4, kind: output, shape index: {}]  }
   0x1   :  { %10 = vsyncpa [#allocation6], 0 }
   0x2   :  { %11 = vsyncpa [#allocation4], 0  ;;  %s354_s15 = smov [#allocation5]   ;;  %s260_s19 = scalar_lea.hbm %s453_s1, 256 }
   0x3   :  { %s29_s16 = sshll.u32 %s354_s15, 4  ;;  %p261_p0 = scmp.ne.s32.totalorder %s453_s1, %s260_s19  ;;  %s30_s16 = int_to_ptr.vmem [resolvable:$true] %s29_s16 }
   0x4   :  { %p264_p1 = scmp.lt.u32.totalorder %s260_s19, %s453_s1 }
   0x6   :  { %p266_p2 = pnand %p264_p1, %p261_p0 }
   0x8   :  { %269 = shalt.err (!%p266_p2)
}
   0x9   :  { %s270_s24 = scalar_lea.vmem %s30_s16, 256  ;;  %p275_p4 = scmp.lt.s32.totalorder %s30_s16, %s30_s16 }
   0xa   :  { %p271_p3 = scmp.ne.s32.totalorder %s30_s16, %s270_s24  ;;  %p276_p5 = scmp.lt.s32.totalorder %s270_s24, %s270_s24 }
   0xc   :  { %p277_p6 = por %p276_p5, %p275_p4 }
   0xe   :  { %p278_p7 = pnand %p277_p6, %p271_p3 }
  0x10   :  { %281 = shalt.err (!%p278_p7)
}
  0x11   :  { %s355_s25 = smov 128   ;;  %s356_s26 = smov 8  }
  0x12   :  { %35 = dma.hbm_to_vmem [thread:$0]  %s453_s1, 256, %s30_s16, [#allocation6], %s355_s25, %s355_s25, %s356_s26  }
  0x13   :  { %s357_s29 = smov [#allocation2]   ;;  %s282_s7 = scalar_lea.hbm %s452_s0, 128 }
  0x14   :  { %s17_s30 = sshll.u32 %s357_s29, 4  ;;  %p283_p8 = scmp.ne.s32.totalorder %s452_s0, %s282_s7  ;;  %s18_s30 = int_to_ptr.vmem [resolvable:$true] %s17_s30 }
  0x15   :  { %p286_p9 = scmp.lt.u32.totalorder %s282_s7, %s452_s0 }
  0x17   :  { %p288_p10 = pnand %p286_p9, %p283_p8 }
  0x19   :  { %291 = shalt.err (!%p288_p10)
}
  0x1a   :  { %s292_s12 = scalar_lea.vmem %s18_s30, 128  ;;  %p297_p12 = scmp.lt.s32.totalorder %s18_s30, %s18_s30 }
  0x1b   :  { %p293_p11 = scmp.ne.s32.totalorder %s18_s30, %s292_s12  ;;  %p298_p13 = scmp.lt.s32.totalorder %s292_s12, %s292_s12 }
  0x1d   :  { %p299_p0 = por %p298_p13, %p297_p12 }
  0x1f   :  { %p300_p1 = pnand %p299_p0, %p293_p11 }
  0x21   :  { %303 = shalt.err (!%p300_p1)
}
  0x22   :  { %s358_s1 = smov 64   ;;  %s359_s13 = smov 4  }
  0x23   :  { %23 = dma.hbm_to_vmem [thread:$0]  %s452_s0, 128, %s18_s30, [#allocation3], %s358_s1, %s358_s1, %s359_s13  }
  0x24   :  { %s360_s16 = smov [#allocation7]   ;;  %s304_s20 = scalar_lea.hbm %s454_s2, 512 }
  0x25   :  { %s41_s17 = sshll.u32 %s360_s16, 4  ;;  %p305_p2 = scmp.ne.s32.totalorder %s454_s2, %s304_s20  ;;  %s42_s17 = int_to_ptr.vmem [resolvable:$true] %s41_s17 }
  0x26   :  { %p308_p3 = scmp.lt.u32.totalorder %s304_s20, %s454_s2 }
  0x28   :  { %p310_p4 = pnand %p308_p3, %p305_p2 }
  0x2a   :  { %313 = shalt.err (!%p310_p4)
}
  0x2b   :  { %s314_s27 = scalar_lea.vmem %s42_s17, 512  ;;  %p319_p6 = scmp.lt.s32.totalorder %s42_s17, %s42_s17 }
  0x2c   :  { %p315_p5 = scmp.ne.s32.totalorder %s42_s17, %s314_s27  ;;  %p320_p7 = scmp.lt.s32.totalorder %s314_s27, %s314_s27 }
  0x2e   :  { %p321_p8 = por %p320_p7, %p319_p6 }
  0x30   :  { %p322_p9 = pnand %p321_p8, %p315_p5 }
  0x32   :  { %325 = shalt.err (!%p322_p9)
}
  0x33   :  { %47 = dma.hbm_to_vmem [thread:$0]  %s454_s2, 512, %s42_s17, [#allocation6], %s358_s1, %s358_s1, %s359_s13  }
  0x34   :  { %348 = dma.done.wait [#allocation3], 128  }
  0x35   :  { %349 = vsyncadd [#allocation3], 4294967168 }
  0x36   :  { %350 = dma.done.wait [#allocation6], 768  }
  0x37   :  { %351 = vsyncadd [#allocation6], 4294966528  ;;  %v361_v0 = vmov 0.0   ;;  %vm362_vm0 = vmmov 0   ;;  %v251_v1 = vld [vmem:[#allocation7] sm:$0xff]   ;;  %v252_v2 = vld [vmem:[#allocation7 + $0x8] sm:$0xff]  }
  0x38   :  { %229 = vmatprep.subr.bf16.mxu0 %v361_v0  ;;  %237 = vmatprep.mubr.msk.bf16.mxu0 %vm362_vm0, %v361_v0  ;;  %v253_v3 = vld [vmem:[#allocation7 + $0x10] sm:$0xff]   ;;  %v254_v4 = vld [vmem:[#allocation7 + $0x18] sm:$0xff]   ;;  %v255_v5 = vld [vmem:[#allocation2] sm:$0xff]   ;;  %vm106_vm1 = vcmask 523264   ;;  %s363_s8 = smov [#allocation8]  }
  0x39   :  { %230 = vmatpush3.bf16.msra.mxu0 %v251_v1  ;;  %v215_v6 = vld [vmem:[%s455_s3] ss:$0 sm:$0xff]  ;;  %v151_v8 = vld [vmem:[#allocation5] sm:$0xff]  ;;  %v152_v12 = vld [vmem:[#allocation5 + $0x8] sm:$0xff]  ;;  %s202_s9 = sshll.u32 %s363_s8, 4  ;;  %s203_s9 = int_to_ptr.vmem [resolvable:$true] %s202_s9 }
  0x3a   :  { %231 = vmatprep.subr.bf16.mxu0 %v361_v0  ;;  %v222_v37 = vld [vmem:[%s455_s3 + $0x1] ss:$0 sm:$0xff]  ;;  %v223_v39 = vld [vmem:[%s455_s3 + $0x2] ss:$0 sm:$0xff]  ;;  %s326_s10 = scalar_lea.vmem %s203_s9, 256  ;;  %p331_p11 = scmp.lt.s32.totalorder %s203_s9, %s203_s9 }
  0x3b   :  { %p327_p10 = scmp.ne.s32.totalorder %s203_s9, %s326_s10  ;;  %p332_p12 = scmp.lt.s32.totalorder %s326_s10, %s326_s10 }
  0x3d   :  { %232 = vmatpush3.bf16.msra.mxu0 %v252_v2  ;;  %p333_p13 = por %p332_p12, %p331_p11 }
  0x3e   :  { %233 = vmatprep.subr.bf16.mxu0 %v361_v0 }
  0x3f   :  { %p334_p0 = pnand %p333_p13, %p327_p10 }
  0x41   :  { %234 = vmatpush3.bf16.msra.mxu0 %v253_v3 }
  0x42   :  { %235 = vmatprep.subr.bf16.mxu0 %v361_v0 }
  0x45   :  { %236 = vmatpush3.bf16.msra.mxu0 %v254_v4 }
  0x48   :  { %238 = vmatmul.mubr.msk.bf16.vlgmr.msra.gmra.mrb[0].mxu0 %vm106_vm1, %v255_v5 }
 0x11b   :  { %v144_v7 = vpop.f32.mrb[0].mxu0 }
 0x11c   :  { %v145_v9 = vadd.f32 %v215_v6, %v144_v7  ;;  %v239_v10 = vpop.f32.mrb[1].mxu0 }
 0x11d   :  { %v147_v11 = vpop.f32.mrb[2].mxu0 }
 0x11e   :  { %v153_v13 = vadd.f32 %v151_v8, %v145_v9  ;;  %v148_v14 = vadd.f32 %v215_v6, %v147_v11  ;;  %v240_v15 = vpop.f32.mrb[3].mxu0 }
 0x120   :  { %v154_v16 = vadd.f32 %v152_v12, %v148_v14  ;;  %155 = vadd.xlane.f32.xlu0 %v153_v13  ;;  %v159_v17 = vmul.f32 %v153_v13, %v153_v13 }
 0x122   :  { %161 = vadd.xlane.f32.xlu1 %v159_v17  ;;  %v160_v18 = vmul.f32 %v154_v16, %v154_v16 }
 0x124   :  { %157 = vadd.xlane.f32.xlu0 %v154_v16 }
 0x126   :  { %163 = vadd.xlane.f32.xlu1 %v160_v18 }
 0x1ad   :  { %v156_v19 = vpop.xlane.xlu0 %155 }
 0x1ae   :  { %v165_v20 = vmul.f32 0.03125, %v156_v19 }
 0x1af   :  { %v162_v21 = vpop.xlane.xlu1 %161 }
 0x1b0   :  { %v169_v22 = vmul.f32 %v165_v20, %v165_v20  ;;  %v167_v23 = vmul.f32 0.03125, %v162_v21  ;;  %v179_v35 = vsub.f32 %v153_v13, %v165_v20 }
 0x1b1   :  { %v158_v24 = vpop.xlane.xlu0 %157 }
 0x1b2   :  { %v171_v25 = vsub.f32 %v167_v23, %v169_v22  ;;  %v166_v26 = vmul.f32 0.03125, %v158_v24 }
 0x1b3   :  { %v164_v27 = vpop.xlane.xlu1 %163 }
 0x1b4   :  { %v173_v28 = vmax.f32 %v171_v25, 0.0  ;;  %v170_v29 = vmul.f32 %v166_v26, %v166_v26  ;;  %v168_v30 = vmul.f32 0.03125, %v164_v27  ;;  %v180_v40 = vsub.f32 %v154_v16, %v166_v26 }
 0x1b6   :  { %v175_v31 = vadd.f32 1e-12, %v173_v28  ;;  %v172_v32 = vsub.f32 %v168_v30, %v170_v29 }
 0x1b8   :  { %256 = vrsqrt.f32 %v175_v31  ;;  %v174_v33 = vmax.f32 %v172_v32, 0.0 }
 0x1ba   :  { %v176_v34 = vadd.f32 1e-12, %v174_v33 }
 0x1bc   :  { %258 = vrsqrt.f32 %v176_v34 }
 0x1c2   :  { %v257_v36 = vpop.eup %256 }
 0x1c3   :  { %v181_v38 = vmul.f32 %v257_v36, %v179_v35 }
 0x1c5   :  { %v187_v41 = vmul.f32 %v222_v37, %v181_v38 }
 0x1c6   :  { %v259_v42 = vpop.eup %258 }
 0x1c7   :  { %v182_v43 = vmul.f32 %v259_v42, %v180_v40  ;;  %v193_v44 = vadd.f32 %v223_v39, %v187_v41 }
 0x1c9   :  { %v188_v45 = vmul.f32 %v222_v37, %v182_v43  ;;  %195 = vst [vmem:[#allocation8] sm:$0xff] %v193_v44 }
 0x1cb   :  { %v194_v46 = vadd.f32 %v223_v39, %v188_v45 }
 0x1cd   :  { %196 = vst [vmem:[#allocation8 + $0x8] sm:$0xff] %v194_v46 }
 0x1ce   :  { %337 = shalt.err (!%p334_p0)
}
 0x1cf   :  { %s338_s12 = scalar_lea.hbm %s456_s4, 256 }
 0x1d0   :  { %p339_p1 = scmp.ne.s32.totalorder %s456_s4, %s338_s12  ;;  %p342_p2 = scmp.lt.u32.totalorder %s338_s12, %s456_s4 }
 0x1d2   :  { %p344_p3 = pnand %p342_p2, %p339_p1 }
 0x1d4   :  { %347 = shalt.err (!%p344_p3)
}
 0x1d5   :  { %208 = dma.vmem_to_hbm [thread:$0]  %s203_s9, 256, %s456_s4, [#allocation4], %s355_s25, %s355_s25, %s356_s26  }
 0x1d6   :  { %352 = dma.done.wait [#allocation4], 256  }
 0x1d7   :  { %353 = vsyncadd [#allocation4], 4294967040 }
 0x1d8   :  { %212 = vsyncpa [#allocation3], 1 }
 0x1d9   :  { %213 = vsyncpa [#allocation6], 1 }
 0x1da   :  { %214 = vsyncpa [#allocation4], 1 }

</bundles_post_ra>
